<compile_context>
chip_gen: v7x
topology: tpu7x:2x2x1
jax: 0.10.0
libtpu: 0.0.40
codegen_flags: <defaults>
</compile_context>

<pallas_src>
import functools

import jax
import jax.numpy as jnp
import numpy as np
from jax.experimental import pallas as pl
from jax.experimental.pallas import tpu as pltpu

IN_DIM = 4
H1 = 512
H2 = 256
OUT_DIM = 2
OUT_PAD = 128  # lane-dense output width (>= 128)


def dqn_kernel(x_ref, w1_ref, b1_ref, w2_ref, b2_ref, w3_ref, b3_ref, q_ref):
    # fc1 + ReLU: bf16 MXU matmul, f32 accumulate; bias/ReLU in f32 on VPU.
    x = x_ref[...].astype(jnp.bfloat16)
    h1 = jnp.dot(x, w1_ref[...], preferred_element_type=jnp.float32)
    h1 = jnp.maximum(h1 + b1_ref[...], 0.0)
    # fc2 + ReLU
    h2 = jnp.dot(h1.astype(jnp.bfloat16), w2_ref[...],
                 preferred_element_type=jnp.float32)
    h2 = jnp.maximum(h2 + b2_ref[...], 0.0)
    # fc3 -- padded to OUT_PAD lanes so the store below is an unmasked vst.
    q = jnp.dot(h2.astype(jnp.bfloat16), w3_ref[...],
                preferred_element_type=jnp.float32)
    q_ref[...] = (q + b3_ref[...]).astype(q_ref.dtype)


def _round_up(n, m):
    return ((n + m - 1) // m) * m


@functools.partial(jax.jit, static_argnames=("block_b",))
def dqn_forward(x, params, block_b=512):
    """x: [B, 4] f32.  params from prepare_params().  Returns [B, 2] f32."""
    w1, b1, w2, b2, w3p, b3p = params
    B = x.shape[0]

    # Batch tiling: small B -> one tile; large B -> 512-row tiles pipelined
    # with weights held resident in VMEM across tiles.
    tb = min(block_b, _round_up(B, 8))
    b_pad = _round_up(B, tb)
    if b_pad != B:
        x = jnp.pad(x, ((0, b_pad - B), (0, 0)))
    n_tiles = b_pad // tb

    flops = 2 * b_pad * (IN_DIM * H1 + H1 * H2 + H2 * OUT_PAD)
    bytes_accessed = (
        x.size * x.dtype.itemsize
        + sum(int(p.size) * p.dtype.itemsize for p in params)
        + b_pad * OUT_PAD * 4
    )

    q_pad = pl.pallas_call(
        dqn_kernel,
        out_shape=jax.ShapeDtypeStruct((b_pad, OUT_PAD), jnp.float32),
        grid=(n_tiles,),
        in_specs=[
            pl.BlockSpec((tb, IN_DIM), lambda i: (i, 0)),   # x: tiled over batch
            pl.BlockSpec((IN_DIM, H1), lambda i: (0, 0)),   # weights: resident
            pl.BlockSpec((1, H1), lambda i: (0, 0)),
            pl.BlockSpec((H1, H2), lambda i: (0, 0)),
            pl.BlockSpec((1, H2), lambda i: (0, 0)),
            pl.BlockSpec((H2, OUT_PAD), lambda i: (0, 0)),
            pl.BlockSpec((1, OUT_PAD), lambda i: (0, 0)),
        ],
        out_specs=pl.BlockSpec((tb, OUT_PAD), lambda i: (i, 0)),
        compiler_params=pltpu.CompilerParams(
            dimension_semantics=("parallel",),  # v7x: shard batch over 2 TCs
        ),
        cost_estimate=pl.CostEstimate(
            flops=flops, transcendentals=0, bytes_accessed=bytes_accessed),
    )(x, w1, b1, w2, b2, w3p, b3p)

    return q_pad[:B, :OUT_DIM]


def init_params(key):
    """f32 params matching PyTorch Linear init (weights stored [in, out])."""
    dims = [(IN_DIM, H1), (H1, H2), (H2, OUT_DIM)]
    raw = []
    for fan_in, fan_out in dims:
        kw, kb, key = jax.random.split(key, 3)
        bound = 1.0 / np.sqrt(fan_in)  # PyTorch Linear default uniform bound
        w = jax.random.uniform(kw, (fan_in, fan_out), jnp.float32, -bound, bound)
        b = jax.random.uniform(kb, (1, fan_out), jnp.float32, -bound, bound)
        raw.extend([w, b])
    return raw


def prepare_params(raw):
    """Kernel-side params: bf16 weights (f32 MXU accumulate), f32 biases,
    fc3 zero-padded from OUT_DIM to OUT_PAD output lanes (done once, not
    per call)."""
    w1, b1, w2, b2, w3, b3 = raw
    w3p = jnp.zeros((H2, OUT_PAD), jnp.float32).at[:, :OUT_DIM].set(w3)
    b3p = jnp.zeros((1, OUT_PAD), jnp.float32).at[:, :OUT_DIM].set(b3)
    return (w1.astype(jnp.bfloat16), b1,
            w2.astype(jnp.bfloat16), b2,
            w3p.astype(jnp.bfloat16), b3p)


def reference_forward(x, raw):
    w1, b1, w2, b2, w3, b3 = raw
    h1 = jnp.maximum(x @ w1 + b1, 0.0)
    h2 = jnp.maximum(h1 @ w2 + b2, 0.0)
    return h2 @ w3 + b3


if __name__ == "__main__":
    key = jax.random.PRNGKey(0)
    kx, kx2, kp = jax.random.split(key, 3)

    raw_params = init_params(kp)
    params = prepare_params(raw_params)

    # Small inference-style batch (CartPole-style 4-dim state).
    B = 8
    x = jax.random.normal(kx, (B, IN_DIM), jnp.float32)
    q = jax.block_until_ready(dqn_forward(x, params))
    q_ref = reference_forward(x, raw_params)
    # bf16 weight storage -> loosened tolerance vs the f32 reference.
    np.testing.assert_allclose(np.asarray(q), np.asarray(q_ref),
                               rtol=3e-2, atol=3e-2)

    # Larger (non-multiple-of-tile) batch exercises the tiled + padded path.
    B2 = 640
    x2 = jax.random.normal(kx2, (B2, IN_DIM), jnp.float32)
    q2 = jax.block_until_ready(dqn_forward(x2, params))
    q2_ref = reference_forward(x2, raw_params)
    assert q2.shape == (B2, OUT_DIM)
    np.testing.assert_allclose(np.asarray(q2), np.asarray(q2_ref),
                               rtol=3e-2, atol=3e-2)

    print("KERNEL_OK")
</pallas_src>

<mosaic_0001>
module attributes {stable_mosaic.version = 11 : i64} {
  func.func @dqn_kernel(%arg0: i32, %arg1: memref<8x4xf32, #tpu.memory_space<vmem>>, %arg2: memref<4x512xbf16, #tpu.memory_space<vmem>>, %arg3: memref<1x512xf32, #tpu.memory_space<vmem>>, %arg4: memref<512x256xbf16, #tpu.memory_space<vmem>>, %arg5: memref<1x256xf32, #tpu.memory_space<vmem>>, %arg6: memref<256x128xbf16, #tpu.memory_space<vmem>>, %arg7: memref<1x128xf32, #tpu.memory_space<vmem>>, %arg8: memref<8x128xf32, #tpu.memory_space<vmem>>) attributes {dimension_semantics = [#tpu.dimension_semantics<parallel>], iteration_bounds = array<i64: 1>, scalar_prefetch = 0 : i64, scratch_operands = 0 : i64, tpu.core_type = #tpu.core_type<tc>, window_params = [{transform_indices = @transform_0, window_bounds = array<i64: 8, 4>}, {pipeline_mode = #tpu.pipeline_mode<synchronous>, transform_indices = @transform_1, window_bounds = array<i64: 4, 512>}, {pipeline_mode = #tpu.pipeline_mode<synchronous>, transform_indices = @transform_2, window_bounds = array<i64: 1, 512>}, {pipeline_mode = #tpu.pipeline_mode<synchronous>, transform_indices = @transform_3, window_bounds = array<i64: 512, 256>}, {pipeline_mode = #tpu.pipeline_mode<synchronous>, transform_indices = @transform_4, window_bounds = array<i64: 1, 256>}, {pipeline_mode = #tpu.pipeline_mode<synchronous>, transform_indices = @transform_5, window_bounds = array<i64: 256, 128>}, {pipeline_mode = #tpu.pipeline_mode<synchronous>, transform_indices = @transform_6, window_bounds = array<i64: 1, 128>}, {transform_indices = @transform_7, window_bounds = array<i64: 8, 128>}]} {
    %c0 = arith.constant 0 : index
    %c0_0 = arith.constant 0 : index
    %0 = vector.load %arg1[%c0, %c0_0] : memref<8x4xf32, #tpu.memory_space<vmem>>, vector<8x4xf32>
    %1 = arith.truncf %0 : vector<8x4xf32> to vector<8x4xbf16>
    %c0_1 = arith.constant 0 : index
    %c0_2 = arith.constant 0 : index
    %2 = vector.load %arg2[%c0_1, %c0_2] : memref<4x512xbf16, #tpu.memory_space<vmem>>, vector<4x512xbf16>
    %cst = arith.constant dense<0.000000e+00> : vector<8x512xf32>
    %3 = tpu.matmul %1, %2, %cst {dimension_numbers = #tpu.dot_dimension_numbers<[1], [0], [0], [1], [0, 0, 1, 1], [], []>} : vector<8x4xbf16>, vector<4x512xbf16>, vector<8x512xf32> -> vector<8x512xf32>
    %c0_3 = arith.constant 0 : index
    %c0_4 = arith.constant 0 : index
    %4 = vector.load %arg3[%c0_3, %c0_4] : memref<1x512xf32, #tpu.memory_space<vmem>>, vector<1x512xf32>
    %5 = vector.broadcast %4 : vector<1x512xf32> to vector<8x512xf32>
    %6 = arith.addf %3, %5 : vector<8x512xf32>
    %cst_5 = arith.constant 0.000000e+00 : f32
    %7 = vector.broadcast %cst_5 : f32 to vector<8x512xf32>
    %8 = arith.maximumf %6, %7 : vector<8x512xf32>
    %9 = arith.truncf %8 : vector<8x512xf32> to vector<8x512xbf16>
    %c0_6 = arith.constant 0 : index
    %c0_7 = arith.constant 0 : index
    %10 = vector.load %arg4[%c0_6, %c0_7] : memref<512x256xbf16, #tpu.memory_space<vmem>>, vector<512x256xbf16>
    %cst_8 = arith.constant dense<0.000000e+00> : vector<8x256xf32>
    %11 = tpu.matmul %9, %10, %cst_8 {dimension_numbers = #tpu.dot_dimension_numbers<[1], [0], [0], [1], [0, 0, 1, 1], [], []>} : vector<8x512xbf16>, vector<512x256xbf16>, vector<8x256xf32> -> vector<8x256xf32>
    %c0_9 = arith.constant 0 : index
    %c0_10 = arith.constant 0 : index
    %12 = vector.load %arg5[%c0_9, %c0_10] : memref<1x256xf32, #tpu.memory_space<vmem>>, vector<1x256xf32>
    %13 = vector.broadcast %12 : vector<1x256xf32> to vector<8x256xf32>
    %14 = arith.addf %11, %13 : vector<8x256xf32>
    %cst_11 = arith.constant 0.000000e+00 : f32
    %15 = vector.broadcast %cst_11 : f32 to vector<8x256xf32>
    %16 = arith.maximumf %14, %15 : vector<8x256xf32>
    %17 = arith.truncf %16 : vector<8x256xf32> to vector<8x256xbf16>
    %c0_12 = arith.constant 0 : index
    %c0_13 = arith.constant 0 : index
    %18 = vector.load %arg6[%c0_12, %c0_13] : memref<256x128xbf16, #tpu.memory_space<vmem>>, vector<256x128xbf16>
    %cst_14 = arith.constant dense<0.000000e+00> : vector<8x128xf32>
    %19 = tpu.matmul %17, %18, %cst_14 {dimension_numbers = #tpu.dot_dimension_numbers<[1], [0], [0], [1], [0, 0, 1, 1], [], []>} : vector<8x256xbf16>, vector<256x128xbf16>, vector<8x128xf32> -> vector<8x128xf32>
    %c0_15 = arith.constant 0 : index
    %c0_16 = arith.constant 0 : index
    %20 = vector.load %arg7[%c0_15, %c0_16] : memref<1x128xf32, #tpu.memory_space<vmem>>, vector<1x128xf32>
    %21 = vector.broadcast %20 : vector<1x128xf32> to vector<8x128xf32>
    %22 = arith.addf %19, %21 : vector<8x128xf32>
    %c0_17 = arith.constant 0 : index
    %c0_18 = arith.constant 0 : index
    %23 = vector.load %arg8[%c0_17, %c0_18] : memref<8x128xf32, #tpu.memory_space<vmem>>, vector<8x128xf32>
    tpu.vector_store %arg8[%c0_17, %c0_18], %22 {strides = array<i32>} : memref<8x128xf32, #tpu.memory_space<vmem>>, vector<8x128xf32>,
    return
  }
  func.func @transform_0(%arg0: i32) -> (i32, i32) {
    %c0_i32 = arith.constant 0 : i32
    %c0_i32_0 = arith.constant 0 : i32
    return %arg0, %c0_i32 : i32, i32
  }
  func.func @transform_1(%arg0: i32) -> (i32, i32) {
    %c0_i32 = arith.constant 0 : i32
    %c0_i32_0 = arith.constant 0 : i32
    %c0_i32_1 = arith.constant 0 : i32
    return %c0_i32, %c0_i32_0 : i32, i32
  }
  func.func @transform_2(%arg0: i32) -> (i32, i32) {
    %c0_i32 = arith.constant 0 : i32
    %c0_i32_0 = arith.constant 0 : i32
    %c0_i32_1 = arith.constant 0 : i32
    return %c0_i32, %c0_i32_0 : i32, i32
  }
  func.func @transform_3(%arg0: i32) -> (i32, i32) {
    %c0_i32 = arith.constant 0 : i32
    %c0_i32_0 = arith.constant 0 : i32
    %c0_i32_1 = arith.constant 0 : i32
    return %c0_i32, %c0_i32_0 : i32, i32
  }
  func.func @transform_4(%arg0: i32) -> (i32, i32) {
    %c0_i32 = arith.constant 0 : i32
    %c0_i32_0 = arith.constant 0 : i32
    %c0_i32_1 = arith.constant 0 : i32
    return %c0_i32, %c0_i32_0 : i32, i32
  }
  func.func @transform_5(%arg0: i32) -> (i32, i32) {
    %c0_i32 = arith.constant 0 : i32
    %c0_i32_0 = arith.constant 0 : i32
    %c0_i32_1 = arith.constant 0 : i32
    return %c0_i32, %c0_i32_0 : i32, i32
  }
  func.func @transform_6(%arg0: i32) -> (i32, i32) {
    %c0_i32 = arith.constant 0 : i32
    %c0_i32_0 = arith.constant 0 : i32
    %c0_i32_1 = arith.constant 0 : i32
    return %c0_i32, %c0_i32_0 : i32, i32
  }
  func.func @transform_7(%arg0: i32) -> (i32, i32) {
    %c0_i32 = arith.constant 0 : i32
    %c0_i32_0 = arith.constant 0 : i32
    return %arg0, %c0_i32 : i32, i32
  }
}

</mosaic_0001>

<bundles_post_ra>
// kernel: dqn_forward.1
= control target key start
LH: loop header
LB: loop body
LE: loop exit
PB: predicated region body
PF: predicated region fallthrough
CT: control target
= control target key end

     0   :  { %12 = vsyncpa [#allocation3], 0  ;;  %s1260_s0 = inlined_call_operand.vmem [shape: f32[8,4], index: 0, kind: input, shape index: {}]   ;;  %s1261_s1 = inlined_call_operand.vmem [shape: bf16[4,512], index: 1, kind: input, shape index: {}]   ;;  %s1262_s2 = inlined_call_operand.vmem [shape: f32[1,512], index: 2, kind: input, shape index: {}]   ;;  %s1263_s3 = inlined_call_operand.hbm [shape: bf16[512,256], index: 3, kind: input, shape index: {}]   ;;  %s1264_s4 = inlined_call_operand.vmem [shape: f32[1,256], index: 4, kind: input, shape index: {}]   ;;  %s1265_s5 = inlined_call_operand.hbm [shape: bf16[256,128], index: 5, kind: input, shape index: {}]   ;;  %s1266_s6 = inlined_call_operand.vmem [shape: f32[1,128], index: 6, kind: input, shape index: {}]   ;;  %s1267_s7 = inlined_call_operand.vmem [shape: f32[8,128], index: 7, kind: output, shape index: {}]  }
   0x1   :  { %13 = vsyncpa [#allocation5], 0  ;;  %s1149_s24 = smov [#allocation2]   ;;  %s1101_s28 = scalar_lea.hbm %s1263_s3, 8192 }
   0x2   :  { %s25_s25 = sshll.u32 %s1149_s24, 4  ;;  %p1102_p0 = scmp.ne.s32.totalorder %s1263_s3, %s1101_s28  ;;  %s26_s25 = int_to_ptr.vmem [resolvable:$true] %s25_s25 }
   0x3   :  { %p1105_p1 = scmp.lt.u32.totalorder %s1101_s28, %s1263_s3 }
   0x5   :  { %p1107_p2 = pnand %p1105_p1, %p1102_p0 }
   0x7   :  { %1110 = shalt.err (!%p1107_p2)
}
   0x8   :  { %s1111_s10 = scalar_lea.vmem %s26_s25, 8192  ;;  %p1116_p4 = scmp.lt.s32.totalorder %s26_s25, %s26_s25 }
   0x9   :  { %p1112_p3 = scmp.ne.s32.totalorder %s26_s25, %s1111_s10  ;;  %p1117_p5 = scmp.lt.s32.totalorder %s1111_s10, %s1111_s10 }
   0xb   :  { %p1118_p6 = por %p1117_p5, %p1116_p4 }
   0xd   :  { %p1119_p7 = pnand %p1118_p6, %p1112_p3 }
   0xf   :  { %1122 = shalt.err (!%p1119_p7)
}
  0x10   :  { %s1150_s11 = smov 128   ;;  %s1151_s12 = smov 8  }
  0x11   :  { %31 = dma.hbm_to_vmem [thread:$0]  %s1263_s3, 8192, %s26_s25, [#allocation3], %s1150_s11, %s1150_s11, %s1151_s12  }
  0x12   :  { %s1152_s15 = smov [#allocation4]   ;;  %s1123_s19 = scalar_lea.hbm %s1265_s5, 2048 }
  0x13   :  { %s39_s16 = sshll.u32 %s1152_s15, 4  ;;  %p1124_p8 = scmp.ne.s32.totalorder %s1265_s5, %s1123_s19  ;;  %s40_s16 = int_to_ptr.vmem [resolvable:$true] %s39_s16 }
  0x14   :  { %p1127_p9 = scmp.lt.u32.totalorder %s1123_s19, %s1265_s5 }
  0x16   :  { %p1129_p10 = pnand %p1127_p9, %p1124_p8 }
  0x18   :  { %1132 = shalt.err (!%p1129_p10)
}
  0x19   :  { %s1133_s24 = scalar_lea.vmem %s40_s16, 2048  ;;  %p1138_p12 = scmp.lt.s32.totalorder %s40_s16, %s40_s16 }
  0x1a   :  { %p1134_p11 = scmp.ne.s32.totalorder %s40_s16, %s1133_s24  ;;  %p1139_p13 = scmp.lt.s32.totalorder %s1133_s24, %s1133_s24 }
  0x1c   :  { %p1140_p0 = por %p1139_p13, %p1138_p12 }
  0x1e   :  { %p1141_p1 = pnand %p1140_p0, %p1134_p11 }
  0x20   :  { %1144 = shalt.err (!%p1141_p1)
}
  0x21   :  { %s1153_s3 = smov 64   ;;  %s1154_s25 = smov 4  }
  0x22   :  { %45 = dma.hbm_to_vmem [thread:$0]  %s1265_s5, 2048, %s40_s16, [#allocation5], %s1153_s3, %s1153_s3, %s1154_s25  }
  0x23   :  { %1145 = dma.done.wait [#allocation3], 8192  }
  0x24   :  { %1146 = vsyncadd [#allocation3], 4294959104 }
  0x25   :  { %1147 = dma.done.wait [#allocation5], 2048  }
  0x26   :  { %1148 = vsyncadd [#allocation5], 4294965248  ;;  %v60_v0 = vlaneseq  ;;  %v1155_v1 = vmov 1983009808   ;;  %v1156_v3 = vmov 0   ;;  %v57_v7 = vld [vmem:[%s1261_s1] sm:$0xff] }
  0x27   :  { %v83_v2 = vunpack.c.l.s4 %v1155_v1  ;;  %147 = vmatprep.mubr.bf16.mxu0 %v1156_v3  ;;  %vm102_vm0 = vcmask 1041408   ;;  %v55_v8 = vld [vmem:[%s1260_s0] sm:$0xff]  ;;  %v81_v9 = vcombine.high %v57_v7, %v57_v7  ;;  %v992_v13 = vld [vmem:[#allocation2 + $0x14] ss:$8 sps:$4 sm:$0xff]   ;;  %v994_v17 = vld [vmem:[#allocation2 + $0x10] ss:$8 sps:$4 sm:$0xff]  }
  0x28   :  { %v1221_v4 = vshrl.u32 %v60_v0, 7  ;;  %v989_v11 = vld [vmem:[#allocation2 + $0x4] ss:$8 sps:$4 sm:$0xff]   ;;  %v991_v12 = vld [vmem:[#allocation2] ss:$8 sps:$4 sm:$0xff]   ;;  %v56_v18 = vpack.c.bf16 %v55_v8, %v55_v8  ;;  %vm98_vm1 = vcmask 31744  }
  0x29   :  { %v84_v5 = vunpack.c.0.s8 %v83_v2  ;;  %601 = vmatprep.subr.bf16.mxu1 %v989_v11  ;;  %v995_v20 = vld [vmem:[#allocation2 + $0x24] ss:$8 sps:$4 sm:$0xff]   ;;  %v1000_v23 = vld [vmem:[#allocation2 + $0x20] ss:$8 sps:$4 sm:$0xff]   ;;  %v1001_v24 = vld [vmem:[#allocation2 + $0x34] ss:$8 sps:$4 sm:$0xff]  }
  0x2a   :  { %602 = vmatpush1.bf16.msra.mxu1 %v991_v12  ;;  %v999_v22 = vld [vmem:[#allocation2 + $0x104] ss:$8 sps:$4 sm:$0xff]   ;;  %v1006_v25 = vld [vmem:[#allocation2 + $0x30] ss:$8 sps:$4 sm:$0xff]   ;;  %v997_v27 = vld [vmem:[#allocation2 + $0x100] ss:$8 sps:$4 sm:$0xff]  }
  0x2b   :  { %v87_v6 = vsub.s32 %v84_v5, %v1221_v4  ;;  %603 = vmatprep.subr.bf16.mxu1 %v992_v13  ;;  %v1007_v26 = vld [vmem:[#allocation2 + $0x44] ss:$8 sps:$4 sm:$0xff]   ;;  %v1005_v28 = vld [vmem:[#allocation2 + $0x114] ss:$8 sps:$4 sm:$0xff]   ;;  %v1012_v29 = vld [vmem:[#allocation2 + $0x40] ss:$8 sps:$4 sm:$0xff]  }
  0x2c   :  { %v1013_v30 = vld [vmem:[#allocation2 + $0x54] ss:$8 sps:$4 sm:$0xff]   ;;  %v1003_v31 = vld [vmem:[#allocation2 + $0x110] ss:$8 sps:$4 sm:$0xff]   ;;  %v1011_v32 = vld [vmem:[#allocation2 + $0x124] ss:$8 sps:$4 sm:$0xff]  }
  0x2d   :  { %v88_v10 = vrot.slane %v57_v7, %v87_v6  ;;  %v95_v14 = vrot.slane %v81_v9, %v87_v6  ;;  %v1018_v33 = vld [vmem:[#allocation2 + $0x50] ss:$8 sps:$4 sm:$0xff]   ;;  %v1019_v34 = vld [vmem:[#allocation2 + $0x64] ss:$8 sps:$4 sm:$0xff]   ;;  %v1009_v35 = vld [vmem:[#allocation2 + $0x120] ss:$8 sps:$4 sm:$0xff]  }
  0x2e   :  { %604 = vmatpush1.bf16.msra.mxu1 %v994_v17  ;;  %v1017_v36 = vld [vmem:[#allocation2 + $0x134] ss:$8 sps:$4 sm:$0xff]   ;;  %v1024_v37 = vld [vmem:[#allocation2 + $0x60] ss:$8 sps:$4 sm:$0xff]   ;;  %v1015_v39 = vld [vmem:[#allocation2 + $0x130] ss:$8 sps:$4 sm:$0xff]  }
  0x2f   :  { %v96_v15 = vcombine.high %v88_v10, %v88_v10  ;;  %v104_v16 = vsel %vm102_vm0, %v88_v10, 0  ;;  %v97_v19 = vcombine.high %v95_v14, %v95_v14  ;;  %v110_v21 = vsel %vm102_vm0, %v95_v14, 0  ;;  %605 = vmatprep.subr.bf16.mxu1 %v995_v20  ;;  %v1025_v38 = vld [vmem:[#allocation2 + $0x74] ss:$8 sps:$4 sm:$0xff]   ;;  %v1023_v40 = vld [vmem:[#allocation2 + $0x144] ss:$8 sps:$4 sm:$0xff]  }
  0x30   :  { %v1030_v41 = vld [vmem:[#allocation2 + $0x70] ss:$8 sps:$4 sm:$0xff]   ;;  %v1031_v42 = vld [vmem:[#allocation2 + $0x84] ss:$8 sps:$4 sm:$0xff]   ;;  %v1021_v43 = vld [vmem:[#allocation2 + $0x140] ss:$8 sps:$4 sm:$0xff]  }
  0x31   :  { %869 = vmatprep.subr.msk.bf16.mxu0 %vm102_vm0, %v96_v15  ;;  %v1029_v44 = vld [vmem:[#allocation2 + $0x154] ss:$8 sps:$4 sm:$0xff]   ;;  %v1036_v45 = vld [vmem:[#allocation2 + $0x80] ss:$8 sps:$4 sm:$0xff]   ;;  %v1027_v47 = vld [vmem:[#allocation2 + $0x150] ss:$8 sps:$4 sm:$0xff]  }
  0x32   :  { %116 = vmatpush1.bf16.msra.mxu0 %v104_v16  ;;  %606 = vmatpush1.bf16.msra.mxu1 %v1000_v23  ;;  %v1037_v46 = vld [vmem:[#allocation2 + $0x94] ss:$8 sps:$4 sm:$0xff]   ;;  %v1035_v48 = vld [vmem:[#allocation2 + $0x164] ss:$8 sps:$4 sm:$0xff]   ;;  %v1042_v49 = vld [vmem:[#allocation2 + $0x90] ss:$8 sps:$4 sm:$0xff]  }
  0x33   :  { %871 = vmatprep.subr.msk.bf16.mxu0 %vm102_vm0, %v97_v19  ;;  %607 = vmatprep.subr.bf16.mxu1 %v1001_v24  ;;  %v1043_v50 = vld [vmem:[#allocation2 + $0xa4] ss:$8 sps:$4 sm:$0xff]   ;;  %v1033_v51 = vld [vmem:[#allocation2 + $0x160] ss:$8 sps:$4 sm:$0xff]   ;;  %v1041_v52 = vld [vmem:[#allocation2 + $0x174] ss:$8 sps:$4 sm:$0xff]  }
  0x34   :  { %v1048_v53 = vld [vmem:[#allocation2 + $0xa0] ss:$8 sps:$4 sm:$0xff]   ;;  %v1049_v54 = vld [vmem:[#allocation2 + $0xb4] ss:$8 sps:$4 sm:$0xff]   ;;  %v1039_v55 = vld [vmem:[#allocation2 + $0x170] ss:$8 sps:$4 sm:$0xff]  }
  0x35   :  { %870 = vmatmul.mubr.msk.bf16.vlgmr.msra.gmra.mrb[0].mxu0 %vm98_vm1, %v56_v18  ;;  %v1047_v56 = vld [vmem:[#allocation2 + $0x184] ss:$8 sps:$4 sm:$0xff]   ;;  %v1054_v57 = vld [vmem:[#allocation2 + $0xb0] ss:$8 sps:$4 sm:$0xff]   ;;  %v1045_v59 = vld [vmem:[#allocation2 + $0x180] ss:$8 sps:$4 sm:$0xff]  }
  0x36   :  { %157 = vmatpush1.bf16.msra.mxu0 %v110_v21  ;;  %188 = vmatprep.mubr.bf16.mxu0 %v1156_v3  ;;  %v1055_v58 = vld [vmem:[#allocation2 + $0xc4] ss:$8 sps:$4 sm:$0xff]   ;;  %v1053_v60 = vld [vmem:[#allocation2 + $0x194] ss:$8 sps:$4 sm:$0xff]   ;;  %v1060_v61 = vld [vmem:[#allocation2 + $0xc0] ss:$8 sps:$4 sm:$0xff]  }
  0x37   :  { %642 = vmatprep.subr.bf16.mxu0 %v999_v22  ;;  %608 = vmatpush1.bf16.msra.mxu1 %v1006_v25  ;;  %v1061_v62 = vld [vmem:[#allocation2 + $0xd4] ss:$8 sps:$4 sm:$0xff]   ;;  %v1051_v63 = vld [vmem:[#allocation2 + $0x190] ss:$8 sps:$4 sm:$0xff]   ;;  %v1059_v0 = vld [vmem:[#allocation2 + $0x1a4] ss:$8 sps:$4 sm:$0xff]  }
  0x38   :  { %609 = vmatprep.subr.bf16.mxu1 %v1007_v26  ;;  %v1066_v1 = vld [vmem:[#allocation2 + $0xd0] ss:$8 sps:$4 sm:$0xff]   ;;  %v1057_v2 = vld [vmem:[#allocation2 + $0x1a0] ss:$8 sps:$4 sm:$0xff]   ;;  %v1065_v3 = vld [vmem:[#allocation2 + $0x1b4] ss:$8 sps:$4 sm:$0xff]  }
  0x39   :  { %v1063_v5 = vld [vmem:[#allocation2 + $0x1b0] ss:$8 sps:$4 sm:$0xff]   ;;  %v1067_v6 = vld [vmem:[#allocation2 + $0xe4] ss:$8 sps:$4 sm:$0xff]   ;;  %v1069_v8 = vld [vmem:[#allocation2 + $0x1c0] ss:$8 sps:$4 sm:$0xff]  }
  0x3a   :  { %v1071_v7 = vld [vmem:[#allocation2 + $0x1c4] ss:$8 sps:$4 sm:$0xff]   ;;  %v1072_v9 = vld [vmem:[#allocation2 + $0xe0] ss:$8 sps:$4 sm:$0xff]   ;;  %v1073_v10 = vld [vmem:[#allocation2 + $0xf4] ss:$8 sps:$4 sm:$0xff]  }
  0x3b   :  { %610 = vmatpush1.bf16.msra.mxu1 %v1012_v29  ;;  %v1077_v11 = vld [vmem:[#allocation2 + $0x1d4] ss:$8 sps:$4 sm:$0xff]   ;;  %v1075_v12 = vld [vmem:[#allocation2 + $0x1d0] ss:$8 sps:$4 sm:$0xff]   ;;  %v1081_v14 = vld [vmem:[#allocation2 + $0x1e4] ss:$8 sps:$4 sm:$0xff]  }
  0x3c   :  { %611 = vmatprep.subr.bf16.mxu1 %v1013_v30  ;;  %v1078_v13 = vld [vmem:[#allocation2 + $0xf0] ss:$8 sps:$4 sm:$0xff]   ;;  %v1079_v15 = vld [vmem:[#allocation2 + $0x1e0] ss:$8 sps:$4 sm:$0xff]   ;;  %v1084_v16 = vld [vmem:[#allocation2 + $0x1f4] ss:$8 sps:$4 sm:$0xff]  }
  0x3d   :  { %872 = vmatmul.mubr.msk.bf16.vlgmr.msra.gmra.mrb[4].mxu0 %vm98_vm1, %v56_v18  ;;  %v1082_v17 = vld [vmem:[#allocation2 + $0x1f0] ss:$8 sps:$4 sm:$0xff]   ;;  %v1085_v18 = vld [vmem:[#allocation4 + $0x40] sm:$0xff]   ;;  %v62_v19 = vsub.s32 0, %v1221_v4  ;;  %v66_v21 = vsub.s32 1, %v1221_v4  ;;  %v74_v30 = vsub.s32 3, %v1221_v4 }
  0x3e   :  { %643 = vmatpush1.bf16.msra.mxu0 %v997_v27  ;;  %v58_v20 = vld [vmem:[%s1262_s2] sm:$0xf]  ;;  %v70_v27 = vsub.s32 2, %v1221_v4 }
  0x3f   :  { %644 = vmatprep.subr.bf16.mxu0 %v1005_v28  ;;  %612 = vmatpush1.bf16.msra.mxu1 %v1018_v33  ;;  %v63_v22 = vrot.slane %v58_v20, %v62_v19  ;;  %v67_v23 = vrot.slane %v58_v20, %v66_v21  ;;  %v937_v4 = vld [vmem:[%s1266_s6] ss:$0 sm:$0xff] }
  0x40   :  { %613 = vmatprep.subr.bf16.mxu1 %v1019_v34  ;;  %v71_v34 = vrot.slane %v58_v20, %v70_v27 }
  0x42   :  { %645 = vmatpush1.bf16.msra.mxu0 %v1003_v31 }
  0x43   :  { %646 = vmatprep.subr.bf16.mxu0 %v1011_v32  ;;  %614 = vmatpush1.bf16.msra.mxu1 %v1024_v37  ;;  %v1086_v37 = vld [vmem:[#allocation4] sm:$0xff]  }
  0x44   :  { %615 = vmatprep.subr.bf16.mxu1 %v1025_v38 }
  0x46   :  { %647 = vmatpush1.bf16.msra.mxu0 %v1009_v35 }
  0x47   :  { %648 = vmatprep.subr.bf16.mxu0 %v1017_v36  ;;  %616 = vmatpush1.bf16.msra.mxu1 %v1030_v41  ;;  %v75_v36 = vrot.slane %v58_v20, %v74_v30 }
  0x48   :  { %617 = vmatprep.subr.bf16.mxu1 %v1031_v42 }
  0x4a   :  { %649 = vmatpush1.bf16.msra.mxu0 %v1015_v39  ;;  %v1087_v39 = vld [vmem:[#allocation4 + $0x48] sm:$0xff]  }
  0x4b   :  { %650 = vmatprep.subr.bf16.mxu0 %v1023_v40  ;;  %618 = vmatpush1.bf16.msra.mxu1 %v1036_v45  ;;  %v1088_v45 = vld [vmem:[#allocation4 + $0x8] sm:$0xff]  }
  0x4c   :  { %619 = vmatprep.subr.bf16.mxu1 %v1037_v46 }
  0x4e   :  { %651 = vmatpush1.bf16.msra.mxu0 %v1021_v43 }
  0x4f   :  { %652 = vmatprep.subr.bf16.mxu0 %v1029_v44  ;;  %620 = vmatpush1.bf16.msra.mxu1 %v1042_v49 }
  0x50   :  { %621 = vmatprep.subr.bf16.mxu1 %v1043_v50 }
  0x52   :  { %653 = vmatpush1.bf16.msra.mxu0 %v1027_v47 }
  0x53   :  { %654 = vmatprep.subr.bf16.mxu0 %v1035_v48  ;;  %622 = vmatpush1.bf16.msra.mxu1 %v1048_v53  ;;  %v1089_v48 = vld [vmem:[#allocation4 + $0x50] sm:$0xff]   ;;  %v1091_v53 = vld [vmem:[#allocation4 + $0x58] sm:$0xff]  }
  0x54   :  { %623 = vmatprep.subr.bf16.mxu1 %v1049_v54  ;;  %v1092_v54 = vld [vmem:[#allocation4 + $0x18] sm:$0xff]  }
  0x56   :  { %655 = vmatpush1.bf16.msra.mxu0 %v1033_v51  ;;  %v1090_v51 = vld [vmem:[#allocation4 + $0x10] sm:$0xff]  }
  0x57   :  { %656 = vmatprep.subr.bf16.mxu0 %v1041_v52  ;;  %624 = vmatpush1.bf16.msra.mxu1 %v1054_v57  ;;  %v1095_v57 = vld [vmem:[#allocation4 + $0x68] sm:$0xff]  }
  0x58   :  { %625 = vmatprep.subr.bf16.mxu1 %v1055_v58  ;;  %v1096_v58 = vld [vmem:[#allocation4 + $0x28] sm:$0xff]  }
  0x5a   :  { %657 = vmatpush1.bf16.msra.mxu0 %v1039_v55  ;;  %v1093_v55 = vld [vmem:[#allocation4 + $0x60] sm:$0xff]  }
  0x5b   :  { %658 = vmatprep.subr.bf16.mxu0 %v1047_v56  ;;  %626 = vmatpush1.bf16.msra.mxu1 %v1060_v61  ;;  %v1094_v56 = vld [vmem:[#allocation4 + $0x20] sm:$0xff]   ;;  %v1099_v61 = vld [vmem:[#allocation4 + $0x78] sm:$0xff]  }
  0x5c   :  { %627 = vmatprep.subr.bf16.mxu1 %v1061_v62  ;;  %v1100_v62 = vld [vmem:[#allocation4 + $0x38] sm:$0xff]  }
  0x5e   :  { %659 = vmatpush1.bf16.msra.mxu0 %v1045_v59  ;;  %v1097_v59 = vld [vmem:[#allocation4 + $0x70] sm:$0xff]  }
  0x5f   :  { %660 = vmatprep.subr.bf16.mxu0 %v1053_v60  ;;  %628 = vmatpush1.bf16.msra.mxu1 %v1066_v1  ;;  %v1098_v60 = vld [vmem:[#allocation4 + $0x30] sm:$0xff]  }
  0x60   :  { %629 = vmatprep.subr.bf16.mxu1 %v1067_v6 }
  0x62   :  { %661 = vmatpush1.bf16.msra.mxu0 %v1051_v63  ;;  %v269_v63 = vld [vmem:[%s1264_s4] sm:$0x3] }
  0x63   :  { %662 = vmatprep.subr.bf16.mxu0 %v1059_v0  ;;  %630 = vmatpush1.bf16.msra.mxu1 %v1072_v9  ;;  %v278_v6 = vrot.slane %v269_v63, %v66_v21 }
  0x64   :  { %631 = vmatprep.subr.bf16.mxu1 %v1073_v10 }
  0x66   :  { %663 = vmatpush1.bf16.msra.mxu0 %v1057_v2 }
  0x67   :  { %664 = vmatprep.subr.bf16.mxu0 %v1065_v3  ;;  %632 = vmatpush1.bf16.msra.mxu1 %v1078_v13  ;;  %v274_v3 = vrot.slane %v269_v63, %v62_v19 }
  0x68   :  { %954 = vmatprep.subr.bf16.mxu1 %v1085_v18 }
  0x6a   :  { %665 = vmatpush1.bf16.msra.mxu0 %v1063_v5 }
  0x6b   :  { %666 = vmatprep.subr.bf16.mxu0 %v1071_v7 }
  0x6e   :  { %667 = vmatpush1.bf16.msra.mxu0 %v1069_v8 }
  0x6f   :  { %668 = vmatprep.subr.bf16.mxu0 %v1077_v11 }
  0x72   :  { %669 = vmatpush1.bf16.msra.mxu0 %v1075_v12 }
  0x73   :  { %670 = vmatprep.subr.bf16.mxu0 %v1081_v14 }
  0x76   :  { %671 = vmatpush1.bf16.msra.mxu0 %v1079_v15 }
  0x77   :  { %672 = vmatprep.subr.bf16.mxu0 %v1084_v16 }
  0x7a   :  { %673 = vmatpush1.bf16.msra.mxu0 %v1082_v17 }
 0x108   :  { %v149_v24 = vpop.f32.mrb[0].mxu0 }
 0x109   :  { %v150_v25 = vadd.f32 %v149_v24, %v63_v22  ;;  %v151_v26 = vpop.f32.mrb[1].mxu0 }
 0x10a   :  { %v152_v28 = vadd.f32 %v151_v26, %v67_v23  ;;  %v153_v29 = vpop.f32.mrb[2].mxu0 }
 0x10b   :  { %v197_v31 = vmax.f32 %v150_v25, 0.0  ;;  %v154_v32 = vpop.f32.mrb[3].mxu0 }
 0x10c   :  { %v198_v33 = vmax.f32 %v152_v28, 0.0 }
 0x10d   :  { %v201_v38 = vpack.c.bf16 %v197_v31, %v197_v31 }
 0x10e   :  { %v202_v35 = vpack.c.bf16 %v198_v33, %v198_v33 }
 0x110   :  { %v190_v40 = vpop.f32.mrb[4].mxu0  ;;  %633 = vmatprep.mubr.bf16.mxu1 %v202_v35 }
 0x111   :  { %v191_v41 = vadd.f32 %v190_v40, %v71_v34  ;;  %v192_v42 = vpop.f32.mrb[5].mxu0  ;;  %634 = vmatmul.mubr.bf16.vlgmr.msra.gmra.mrb[0].mxu1 %v201_v38 }
 0x112   :  { %v193_v43 = vadd.f32 %v192_v42, %v75_v36  ;;  %v194_v44 = vpop.f32.mrb[6].mxu0  ;;  %955 = vmatpush3.bf16.msra.mxu1 %v1086_v37 }
 0x113   :  { %v199_v46 = vmax.f32 %v191_v41, 0.0  ;;  %v195_v47 = vpop.f32.mrb[7].mxu0  ;;  %956 = vmatprep.subr.bf16.mxu1 %v1087_v39 }
 0x114   :  { %v200_v49 = vmax.f32 %v193_v43, 0.0 }
 0x115   :  { %v203_v52 = vpack.c.bf16 %v199_v46, %v199_v46 }
 0x116   :  { %v204_v50 = vpack.c.bf16 %v200_v49, %v200_v49  ;;  %957 = vmatpush3.bf16.msra.mxu1 %v1088_v45 }
 0x117   :  { %958 = vmatprep.subr.bf16.mxu1 %v1089_v48 }
 0x118   :  { %674 = vmatprep.mubr.bf16.mxu0 %v204_v50 }
 0x119   :  { %675 = vmatmul.mubr.bf16.vlgmr.msra.gmra.mrb[8].mxu0 %v203_v52 }
 0x11a   :  { %959 = vmatpush3.bf16.msra.mxu1 %v1090_v51 }
 0x11b   :  { %960 = vmatprep.subr.bf16.mxu1 %v1091_v53 }
 0x11e   :  { %961 = vmatpush3.bf16.msra.mxu1 %v1092_v54 }
 0x11f   :  { %962 = vmatprep.subr.bf16.mxu1 %v1093_v55 }
 0x122   :  { %963 = vmatpush3.bf16.msra.mxu1 %v1094_v56 }
 0x123   :  { %964 = vmatprep.subr.bf16.mxu1 %v1095_v57 }
 0x126   :  { %965 = vmatpush3.bf16.msra.mxu1 %v1096_v58 }
 0x127   :  { %966 = vmatprep.subr.bf16.mxu1 %v1097_v59 }
 0x12a   :  { %967 = vmatpush3.bf16.msra.mxu1 %v1098_v60 }
 0x12b   :  { %968 = vmatprep.subr.bf16.mxu1 %v1099_v61 }
 0x12e   :  { %969 = vmatpush3.bf16.msra.mxu1 %v1100_v62 }
 0x1e4   :  { %v635_v0 = vpop.f32.mrb[0].mxu1 }
 0x1e5   :  { %v637_v1 = vpop.f32.mrb[1].mxu1  ;;  %v636_v7 = vadd.f32 %v635_v0, %v274_v3 }
 0x1e6   :  { %v639_v2 = vpop.f32.mrb[2].mxu1  ;;  %v638_v8 = vadd.f32 %v637_v1, %v278_v6 }
 0x1e7   :  { %v640_v5 = vpop.f32.mrb[3].mxu1 }
 0x1ec   :  { %v676_v9 = vpop.f32.mrb[8].mxu0 }
 0x1ed   :  { %v677_v10 = vadd.f32 %v676_v9, %v636_v7  ;;  %v678_v11 = vpop.f32.mrb[9].mxu0 }
 0x1ee   :  { %v679_v12 = vadd.f32 %v678_v11, %v638_v8  ;;  %v680_v13 = vpop.f32.mrb[10].mxu0 }
 0x1ef   :  { %v683_v14 = vmax.f32 %v677_v10, 0.0  ;;  %v681_v15 = vpop.f32.mrb[11].mxu0 }
 0x1f0   :  { %v684_v16 = vmax.f32 %v679_v12, 0.0 }
 0x1f1   :  { %v685_v18 = vpack.c.bf16 %v683_v14, %v683_v14 }
 0x1f2   :  { %v686_v17 = vpack.c.bf16 %v684_v16, %v684_v16 }
 0x1f4   :  { %854 = vmatprep.mubr.bf16.mxu1 %v686_v17 }
 0x1f5   :  { %855 = vmatmul.mubr.bf16.vlgmr.msra.gmra.mrb[4].mxu1 %v685_v18 }
 0x2c8   :  { %v970_v20 = vpop.f32.mrb[4].mxu1 }
 0x2c9   :  { %v971_v19 = vpop.f32.mrb[5].mxu1 }
 0x2ca   :  { %v972_v21 = vadd.f32 %v971_v19, %v970_v20  ;;  %v973_v22 = vpop.f32.mrb[6].mxu1 }
 0x2cb   :  { %v974_v23 = vpop.f32.mrb[7].mxu1 }
 0x2cc   :  { %v857_v24 = vadd.f32 %v972_v21, %v937_v4 }
 0x2ce   :  { %862 = vst [vmem:[%s1267_s7] sm:$0xff] %v857_v24 }
 0x2cf   :  { %867 = vsyncpa [#allocation3], 1 }
 0x2d0   :  { %868 = vsyncpa [#allocation5], 1 }

</bundles_post_ra>
